<compile_context>
chip_gen: v7x
topology: tpu7x:2x2x1
jax: 0.10.0
libtpu: 0.0.40
codegen_flags: <defaults>
</compile_context>

<pallas_src>
import functools

import jax
import jax.numpy as jnp
from jax.experimental import pallas as pl
from jax.experimental.pallas import tpu as pltpu


def channel_atten_kernel(xkv_ref, xkvt_ref, m_ref, gamma_ref, out_ref, *,
                         tq, bf16_exp):
    # xkv_ref  : (N, C) bf16  all patch tokens (keys / values, also queries)
    # xkvt_ref : (C, N) bf16  pre-transposed tokens (energy-matmul RHS)
    # m_ref    : (C, C) bf16  fused score weight  Wq^T @ Wk
    # gamma_ref: (1,)   f32 in SMEM
    # out_ref  : (TQ, C)
    q_idx = pl.program_id(1)
    start = pl.multiple_of(q_idx * tq, tq)
    xq = xkv_ref[pl.ds(start, tq), :]                    # in-VMEM slice, no DMA

    # energy = xq @ M @ xkv^T : two lane-dense MXU passes, f32 accumulate,
    # no in-kernel transpose (RHS already (C, N)).
    qm = jnp.dot(xq, m_ref[...], preferred_element_type=jnp.float32)   # (TQ, C)
    energy = jnp.dot(qm.astype(jnp.bfloat16), xkvt_ref[...],
                     preferred_element_type=jnp.float32)               # (TQ, N)

    # Row-wise softmax with deferred normalization: un-normalized exp weights
    # feed the value matmul; 1/row_sum (and gamma) are applied to the (TQ, C)
    # result instead of the (TQ, N) weights.
    m_row = jnp.max(energy, axis=-1, keepdims=True)
    if bf16_exp:
        # v6e/v7x: bf16 EUP -> exp directly in the MXU dtype.
        p = jnp.exp((energy - m_row).astype(jnp.bfloat16))             # (TQ, N) bf16
    else:
        # v5e and older: no bf16 EUP; exp in f32, single cast afterwards.
        p = jnp.exp(energy - m_row).astype(jnp.bfloat16)
    denom = jnp.sum(p, axis=-1, keepdims=True, dtype=jnp.float32)      # (TQ, 1) f32

    out = jnp.dot(p, xkv_ref[...], preferred_element_type=jnp.float32)  # (TQ, C)
    scale = gamma_ref[0] * pl.reciprocal(denom, approx=True)            # (TQ, 1)
    out_ref[...] = (out * scale).astype(out_ref.dtype)


def _use_bf16_exp():
    # bf16 EUP exists on v6e / v7x; v2-v5 generations must keep f32 exp.
    try:
        kind = jax.devices()[0].device_kind.lower()
    except Exception:
        return False
    return not any(t in kind for t in ("v2", "v3", "v4", "v5"))


def _vmem_limit_bytes():
    # 128 MiB chips (v5e/v6e) -> 64 MiB scoped budget; 64 MiB chips (v7x) -> 32 MiB.
    try:
        cap = int(pltpu.get_tpu_info().vmem_capacity_bytes)
    except Exception:
        cap = 64 * 1024 * 1024
    return int(min(max(cap // 2, 32 * 1024 * 1024), 96 * 1024 * 1024))


def _pick_query_tile(n, c, vmem_budget_bytes, batch):
    """Largest power-of-two query tile dividing N whose working set fits VMEM."""
    candidates = [t for t in (512, 256, 128, 64, 32, 16, 8) if n % t == 0]
    if not candidates:
        candidates = [n]                       # full-extent block (always legal)

    def working_set(tq):
        kv = 2 * (2 * n * c * 2)               # kv + kv_t, double-buffered, bf16
        mm = 2 * c * c * 2                     # fused M, double-buffered, bf16
        tmp = 3 * tq * n * 4                   # energy / exp intermediates (f32)
        out = 2 * tq * c * 4                   # output block, double-buffered
        return kv + mm + tmp + out

    tq = next((t for t in candidates if working_set(t) <= vmem_budget_bytes),
              candidates[-1])
    # Guarantee >=2 grid steps so both v7x TensorCores get work (B=1, small N).
    while batch * (n // tq) < 2 and tq % 16 == 0:
        tq //= 2
    return tq


def channel_atten_forward(x, w_conv, b_conv, w_q, w_k, gamma, patch_size,
                          out_dtype=jnp.float32):
    """x: (B, C, H, W) float32 (NCHW, PyTorch convention)."""
    B, C, H, W = x.shape
    P = patch_size
    Hp, Wp = H // P, W // P
    N = Hp * Wp

    # --- depthwise strided patch conv in XLA on the native layout ----------
    # out[b,h,w,c] = sum_{p,q} x[b,c,h*P+p,w*P+q] * w_conv[c,0,p,q] + b_conv[c]
    xr = x.reshape(B, C, Hp, P, Wp, P).astype(jnp.float32)
    xp = jnp.einsum('bchpwq,cpq->bhwc', xr, w_conv[:, 0].astype(jnp.float32))
    xp = xp + b_conv.astype(jnp.float32)[None, None, None, :]
    xp = xp.reshape(B, N, C)                                   # (B, N, C) f32

    # Fused attention-score weight M = Wq^T @ Wk (f32 accumulate, bf16 on MXU).
    m_fused = jnp.dot(w_q.astype(jnp.float32).T, w_k.astype(jnp.float32),
                      preferred_element_type=jnp.float32).astype(jnp.bfloat16)
    xp_bf16 = xp.astype(jnp.bfloat16)                          # (B, N, C)
    xp_t_bf16 = xp_bf16.transpose(0, 2, 1)                     # (B, C, N), once in XLA
    gamma1 = jnp.asarray(gamma, jnp.float32).reshape(1)

    vmem_limit = _vmem_limit_bytes()
    TQ = _pick_query_tile(N, C, int(vmem_limit * 0.6), B)
    nq = N // TQ

    kernel = functools.partial(channel_atten_kernel, tq=TQ,
                               bf16_exp=_use_bf16_exp())

    out_flat = pl.pallas_call(
        kernel,
        out_shape=jax.ShapeDtypeStruct((B, N, C), out_dtype),
        grid=(B, nq),
        in_specs=[
            pl.BlockSpec((None, N, C), lambda b, q: (b, 0, 0)),   # kv (resident)
            pl.BlockSpec((None, C, N), lambda b, q: (b, 0, 0)),   # kv^T (resident)
            pl.BlockSpec((C, C), lambda b, q: (0, 0)),            # fused M
            pl.BlockSpec(memory_space=pltpu.MemorySpace.SMEM),    # gamma scalar
        ],
        out_specs=pl.BlockSpec((None, TQ, C), lambda b, q: (b, q, 0)),
        compiler_params=pltpu.CompilerParams(
            dimension_semantics=("parallel", "parallel"),
            vmem_limit_bytes=vmem_limit),
    )(xp_bf16, xp_t_bf16, m_fused, gamma1)

    # --- glue: relayout on the SMALL tensor, then one broadcast upsample ---
    out_small = out_flat.reshape(B, Hp, Wp, C).transpose(0, 3, 1, 2)  # (B,C,Hp,Wp)
    out = jnp.broadcast_to(out_small[:, :, :, None, :, None],
                           (B, C, Hp, P, Wp, P))
    return out.reshape(B, C, H, W)


def ref_forward(x, w_conv, b_conv, w_q, w_k, gamma, P):
    """Pure-JAX f32 reference mirroring the PyTorch forward."""
    B, C, H, W = x.shape
    Hp, Wp = H // P, W // P
    xr = x.reshape(B, C, Hp, P, Wp, P)
    xp = jnp.einsum('bchpwq,cpq->bchw', xr, w_conv[:, 0]) \
        + b_conv[None, :, None, None]
    xp = xp.reshape(B, C, -1)                 # (B, C, N)
    xt = xp.transpose(0, 2, 1)                # (B, N, C)
    q = xt @ w_q.T
    k = xt @ w_k.T
    e = q @ k.transpose(0, 2, 1)
    a = jax.nn.softmax(e, axis=-1)
    o = a @ xt                                # (B, N, C)
    o = o.transpose(0, 2, 1).reshape(B, C, Hp, Wp)
    o = jnp.repeat(jnp.repeat(o, P, axis=2), P, axis=3)
    return gamma * o


if __name__ == "__main__":
    # Small shapes consistent with the module (channels = 128 lanes,
    # reduction=16 -> reduced_channels=8, patch_size=4).
    B, C, H, W = 2, 128, 16, 16
    P = 4
    reduction = 16
    R = max(4, C // reduction)                # reduced_channels = 8

    key = jax.random.PRNGKey(0)
    kx, kw, kb, kq, kk = jax.random.split(key, 5)
    x = jax.random.normal(kx, (B, C, H, W), jnp.float32)
    w_conv = jax.random.normal(kw, (C, 1, P, P), jnp.float32) * 0.1  # depthwise conv weight
    b_conv = jax.random.normal(kb, (C,), jnp.float32) * 0.1
    w_q = jax.random.normal(kq, (R, C), jnp.float32) * 0.05          # nn.Linear weight (out, in)
    w_k = jax.random.normal(kk, (R, C), jnp.float32) * 0.05
    gamma = jnp.float32(0.5)   # gamma_init defaults to 0.0; use 0.5 so the output is nonzero

    out = channel_atten_forward(x, w_conv, b_conv, w_q, w_k, gamma, P)
    out = jax.block_until_ready(out)

    ref = ref_forward(x, w_conv, b_conv, w_q, w_k, gamma, P)
    assert out.shape == (B, C, H, W)
    # bf16 MXU inputs + fused Wq^T@Wk score path + approx reciprocal -> relaxed
    # tolerance vs the f32 reference.
    assert jnp.allclose(out, ref, atol=2e-2, rtol=2e-2), \
        float(jnp.max(jnp.abs(out - ref)))

    print("KERNEL_OK")
</pallas_src>

<mosaic_0001>
module attributes {stable_mosaic.version = 11 : i64} {
  func.func @channel_atten_kernel(%arg0: i32, %arg1: i32, %arg2: memref<1x16x128xbf16, #tpu.memory_space<vmem>>, %arg3: memref<1x128x16xbf16, #tpu.memory_space<vmem>>, %arg4: memref<128x128xbf16, #tpu.memory_space<vmem>>, %arg5: memref<1xf32, #tpu.memory_space<smem>>, %arg6: memref<1x16x128xf32, #tpu.memory_space<vmem>>) attributes {dimension_semantics = [#tpu.dimension_semantics<parallel>, #tpu.dimension_semantics<parallel>], iteration_bounds = array<i64: 2, 1>, scalar_prefetch = 0 : i64, scratch_operands = 0 : i64, tpu.core_type = #tpu.core_type<tc>, window_params = [{transform_indices = @transform_0, window_bounds = array<i64: 1, 16, 128>}, {transform_indices = @transform_1, window_bounds = array<i64: 1, 128, 16>}, {pipeline_mode = #tpu.pipeline_mode<synchronous>, transform_indices = @transform_2, window_bounds = array<i64: 128, 128>}, {transform_indices = @transform_3, window_bounds = array<i64: 1>}, {transform_indices = @transform_4, window_bounds = array<i64: 1, 16, 128>}]} {
    %c16_i32 = arith.constant 16 : i32
    %0 = arith.muli %arg1, %c16_i32 : i32
    %1 = tpu.assume_multiple %0, 16 : i32
    %c0 = arith.constant 0 : index
    %2 = arith.index_cast %1 : i32 to index
    %c0_0 = arith.constant 0 : index
    %3 = vector.load %arg2[%c0, %2, %c0_0] : memref<1x16x128xbf16, #tpu.memory_space<vmem>>, vector<1x16x128xbf16>
    %4 = vector.shape_cast %3 : vector<1x16x128xbf16> to vector<16x128xbf16>
    %c0_1 = arith.constant 0 : index
    %c0_2 = arith.constant 0 : index
    %5 = vector.load %arg4[%c0_1, %c0_2] : memref<128x128xbf16, #tpu.memory_space<vmem>>, vector<128x128xbf16>
    %cst = arith.constant dense<0.000000e+00> : vector<16x128xf32>
    %6 = tpu.matmul %4, %5, %cst {dimension_numbers = #tpu.dot_dimension_numbers<[1], [0], [0], [1], [0, 0, 1, 1], [], []>} : vector<16x128xbf16>, vector<128x128xbf16>, vector<16x128xf32> -> vector<16x128xf32>
    %7 = arith.truncf %6 : vector<16x128xf32> to vector<16x128xbf16>
    %c0_3 = arith.constant 0 : index
    %c0_4 = arith.constant 0 : index
    %c0_5 = arith.constant 0 : index
    %8 = vector.load %arg3[%c0_3, %c0_4, %c0_5] : memref<1x128x16xbf16, #tpu.memory_space<vmem>>, vector<1x128x16xbf16>
    %9 = vector.shape_cast %8 : vector<1x128x16xbf16> to vector<128x16xbf16>
    %cst_6 = arith.constant dense<0.000000e+00> : vector<16x16xf32>
    %10 = tpu.matmul %7, %9, %cst_6 {dimension_numbers = #tpu.dot_dimension_numbers<[1], [0], [0], [1], [0, 0, 1, 1], [], []>} : vector<16x128xbf16>, vector<128x16xbf16>, vector<16x16xf32> -> vector<16x16xf32>
    %cst_7 = arith.constant dense<0xFF800000> : vector<16xf32>
    %11 = vector.multi_reduction <maximumf>, %10, %cst_7 [1] : vector<16x16xf32> to vector<16xf32>
    %12 = vector.shape_cast %11 : vector<16xf32> to vector<16x1xf32>
    %13 = vector.broadcast %12 : vector<16x1xf32> to vector<16x16xf32>
    %14 = arith.subf %10, %13 : vector<16x16xf32>
    %15 = arith.truncf %14 : vector<16x16xf32> to vector<16x16xbf16>
    %16 = math.exp %15 : vector<16x16xbf16>
    %17 = arith.extf %16 : vector<16x16xbf16> to vector<16x16xf32>
    %cst_8 = arith.constant dense<0.000000e+00> : vector<16xf32>
    %18 = vector.multi_reduction <add>, %17, %cst_8 [1] : vector<16x16xf32> to vector<16xf32>
    %19 = vector.shape_cast %18 : vector<16xf32> to vector<16x1xf32>
    %c0_9 = arith.constant 0 : index
    %c0_10 = arith.constant 0 : index
    %c0_11 = arith.constant 0 : index
    %20 = vector.load %arg2[%c0_9, %c0_10, %c0_11] : memref<1x16x128xbf16, #tpu.memory_space<vmem>>, vector<1x16x128xbf16>
    %21 = vector.shape_cast %20 : vector<1x16x128xbf16> to vector<16x128xbf16>
    %cst_12 = arith.constant dense<0.000000e+00> : vector<16x128xf32>
    %22 = tpu.matmul %16, %21, %cst_12 {dimension_numbers = #tpu.dot_dimension_numbers<[1], [0], [0], [1], [0, 0, 1, 1], [], []>} : vector<16x16xbf16>, vector<16x128xbf16>, vector<16x128xf32> -> vector<16x128xf32>
    %c0_13 = arith.constant 0 : index
    %23 = memref.load %arg5[%c0_13] : memref<1xf32, #tpu.memory_space<smem>>
    %24 = tpu.reciprocal %19 {approx = true} : vector<16x1xf32> -> vector<16x1xf32>
    %25 = vector.broadcast %23 : f32 to vector<16x1xf32>
    %26 = arith.mulf %25, %24 : vector<16x1xf32>
    %27 = vector.broadcast %26 : vector<16x1xf32> to vector<16x128xf32>
    %28 = arith.mulf %22, %27 : vector<16x128xf32>
    %c0_14 = arith.constant 0 : index
    %c0_15 = arith.constant 0 : index
    %c0_16 = arith.constant 0 : index
    %29 = vector.load %arg6[%c0_14, %c0_15, %c0_16] : memref<1x16x128xf32, #tpu.memory_space<vmem>>, vector<1x16x128xf32>
    %30 = vector.shape_cast %29 : vector<1x16x128xf32> to vector<16x128xf32>
    %31 = vector.shape_cast %28 : vector<16x128xf32> to vector<1x16x128xf32>
    tpu.vector_store %arg6[%c0_14, %c0_15, %c0_16], %31 {strides = array<i32>} : memref<1x16x128xf32, #tpu.memory_space<vmem>>, vector<1x16x128xf32>,
    return
  }
  func.func @transform_0(%arg0: i32, %arg1: i32) -> (i32, i32, i32) {
    %c0_i32 = arith.constant 0 : i32
    %c0_i32_0 = arith.constant 0 : i32
    %c0_i32_1 = arith.constant 0 : i32
    return %arg0, %c0_i32, %c0_i32_0 : i32, i32, i32
  }
  func.func @transform_1(%arg0: i32, %arg1: i32) -> (i32, i32, i32) {
    %c0_i32 = arith.constant 0 : i32
    %c0_i32_0 = arith.constant 0 : i32
    %c0_i32_1 = arith.constant 0 : i32
    return %arg0, %c0_i32, %c0_i32_0 : i32, i32, i32
  }
  func.func @transform_2(%arg0: i32, %arg1: i32) -> (i32, i32) {
    %c0_i32 = arith.constant 0 : i32
    %c0_i32_0 = arith.constant 0 : i32
    %c0_i32_1 = arith.constant 0 : i32
    return %c0_i32, %c0_i32_0 : i32, i32
  }
  func.func @transform_3(%arg0: i32, %arg1: i32) -> i32 {
    %c0_i32 = arith.constant 0 : i32
    %c0_i32_0 = arith.constant 0 : i32
    return %c0_i32 : i32
  }
  func.func @transform_4(%arg0: i32, %arg1: i32) -> (i32, i32, i32) {
    %c0_i32 = arith.constant 0 : i32
    %c0_i32_0 = arith.constant 0 : i32
    return %arg0, %arg1, %c0_i32 : i32, i32, i32
  }
}

</mosaic_0001>

<bundles_post_ra>
// kernel: tpu_custom_call.1
= control target key start
LH: loop header
LB: loop body
LE: loop exit
PB: predicated region body
PF: predicated region fallthrough
CT: control target
= control target key end

     0   :  { %s1106_s0 = inlined_call_operand.vmem [shape: bf16[2,16,128], index: 0, kind: input, shape index: {}]   ;;  %s1107_s1 = inlined_call_operand.vmem [shape: bf16[2,128,16], index: 1, kind: input, shape index: {}]   ;;  %s1108_s2 = inlined_call_operand.vmem [shape: bf16[128,128], index: 2, kind: input, shape index: {}]   ;;  %s1109_s3 = inlined_call_operand.<no memory space> [shape: f32[1], index: 3, kind: input, shape index: {}]   ;;  %s1110_s4 = inlined_call_operand.hbm [shape: f32[2,16,128], index: 4, kind: output, shape index: {}]  }
   0x1   :  { %9 = sst [smem:[#allocation2]] %s1109_s3 }
   0x2   :  { %10 = vsyncpa [#allocation4], 0 }
   0x3   :  { %12 = vsyncpa [#allocation4 + $0x1], 0  ;;  %s942_s17 = smov 0   ;;  %s944_s18 = smov 0  }
   0x4   :  { %s946_s19 = smov 0   ;;  %s948_s20 = smov 0  }
   0x5   :  { %s950_s21 = smov 0   ;;  %s952_s22 = smov 0  }
   0x6 LB: > { %s643_s3 = sadd.s32 4294967295, %s907_s22   ;;  %s644_s23 = sadd.s32 4294967294, %s907_s22   ;;  %s907_s22 = sphi %s952_s22, %s18_s22   ;;  %s903_s21 = sphi %s950_s21, %s1117_s21   ;;  %s899_s20 = sphi %s948_s20, %s1116_s20   ;;  %s895_s19 = sphi %s946_s19, %s1115_s19   ;;  %s891_s18 = sphi %s944_s18, %s1114_s18   ;;  %s887_s17 = sphi %s942_s17, %s1113_s17  }
   0x7   : > { %s30_s24 = sadd.s32 1, %s903_s21  ;;  %s133_s25 = sadd.s32 1, %s895_s19 }
   0x8   : > { %p32_p0 = scmp.ge.s32.totalorder %s30_s24, 2  ;;  %p143_p1 = scmp.ne.s32.totalorder %s895_s19, %s891_s18 }
   0x9   : > { %p144_p2 = scmp.eq.s32.totalorder %s643_s3, 1  ;;  %p149_p3 = scmp.ne.s32.totalorder %s891_s18, %s887_s17 }
   0xa   : > { %s1119_s24 = smov (%p32_p0, %s30_s24), 0  ;;  %p150_p5 = scmp.eq.s32.totalorder %s644_s23, 1 }
   0xb   : > { %p982_p4 = por %p144_p2, %p143_p1  ;;  %s128_s27 = ssub.s32 %s903_s21, %s1119_s24 }
   0xc   : > { %p647_p6 = scmp.ge.s32.totalorder %s907_s22, 1  ;;  %p131_p7 = scmp.eq.s32.totalorder %s128_s27, 0 }
   0xd   : > { %p989_p8 = por %p150_p5, %p149_p3  ;;  %p190_p9 = scmp.lt.s32.totalorder %s907_s22, 3 }
   0xe   : > { %s995_s29 = scalar_select %p131_p7, %s895_s19, %s133_s25  }
   0xf   : > { %p191_p10 = pnand %p647_p6, %p190_p9 }
  0x10   : > { %v805_v0 = vld [vmem:[%s1108_s2] sm:$0xff] (!%p191_p10)   ;;  %v909_v1 = vmov (!%p191_p10), 0.0   ;;  %v806_v2 = vld [vmem:[%s1108_s2 + $0x8] sm:$0xff] (!%p191_p10)   ;;  %vm910_vm0 = vmmov (!%p191_p10), 0   ;;  %p221_p11 = scmp.lt.s32.totalorder (!%p191_p10), %s899_s20, 1  ;;  %v807_v3 = vld [vmem:[%s1108_s2 + $0x10] sm:$0xff] (!%p191_p10)  }
  0x11   : > { %194 = sbr.rel (%p191_p10) target bundleno = 873 (0x369), region = 36  ;;  %700 = vmatprep.subr.bf16.mxu0 (!%p191_p10), %v909_v1  ;;  %720 = vmatprep.subr.bf16.mxu1 (!%p191_p10), %v909_v1  ;;  %v808_v5 = vld [vmem:[%s1108_s2 + $0x18] sm:$0xff] (!%p191_p10)   ;;  %v809_v7 = vld [vmem:[%s1108_s2 + $0x20] sm:$0xff] (!%p191_p10)   ;;  %v810_v9 = vld [vmem:[%s1108_s2 + $0x28] sm:$0xff] (!%p191_p10)   ;;  %vm457_vm1 = vcmask (!%p191_p10), 130048   ;;  %s530_s12 = sld [smem:[#allocation2]] (!%p191_p10) }
  0x12   : > { %701 = vmatpush3.bf16.msra.mxu0 (!%p191_p10), %v805_v0  ;;  %716 = vmatprep.mubr.msk.bf16.mxu0 (!%p191_p10), %vm910_vm0, %v909_v1  ;;  %v811_v11 = vld [vmem:[%s1108_s2 + $0x30] sm:$0xff] (!%p191_p10)   ;;  %v812_v13 = vld [vmem:[%s1108_s2 + $0x38] sm:$0xff] (!%p191_p10)   ;;  %s218_s13 = sand.u32 (!%p191_p10), 1, %s891_s18   ;;  %s679_s3 = sshll.u32 (!%p191_p10), %s899_s20, 8 }
  0x13   : > { %702 = vmatprep.subr.bf16.mxu0 (!%p191_p10), %v909_v1  ;;  %736 = vmatprep.mubr.msk.bf16.mxu1 (!%p191_p10), %vm910_vm0, %v909_v1  ;;  %s1058_s27 = scalar_lea.hbm (!%p191_p10), %s1110_s4, %s679_s3  ;;  %s911_s5 = smov (!%p191_p10), [#allocation3]  }
  0x14   : > { %s833_s6 = sshll.u32 (!%p191_p10), %s911_s5, 4  ;;  %s834_s6 = int_to_ptr.vmem [resolvable:$false] %s833_s6 }
  0x15   : > { %s835_s7 = scalar_lea.vmem (!%p191_p10), %s834_s6, 512 }
  0x16   : > { %703 = vmatpush3.bf16.msra.mxu0 (!%p191_p10), %v806_v2 }
  0x17   : > { %704 = vmatprep.subr.bf16.mxu0 (!%p191_p10), %v909_v1  ;;  %v533_v44 = vstv (!%p191_p10), %s530_s12 }
  0x18   : > { %s222_s8 = scalar_select %p221_p11, %s899_s20, 1 }
  0x19   : > { %s1060_s20 = scalar_lea.sflag [#allocation4], %s218_s13 }
  0x1a   : > { %s677_s11 = sshll.u32 %s222_s8, 3  ;;  %s678_s15 = sshll.u32 %s222_s8, 6  ;;  %705 = vmatpush3.bf16.msra.mxu0 %v807_v3 }
  0x1b   : > { %s1013_s14 = scalar_lea.vmem %s1106_s0, %s677_s11  ;;  %s1018_s23 = scalar_lea.vmem %s1107_s1, %s678_s15  ;;  %706 = vmatprep.subr.bf16.mxu0 %v909_v1 }
  0x1c   : > { %v814_v4 = vld [vmem:[%s1018_s23] sm:$0xff]   ;;  %v815_v6 = vld [vmem:[%s1018_s23 + $0x8] sm:$0xff]   ;;  %v816_v8 = vld [vmem:[%s1018_s23 + $0x10] sm:$0xff]  }
  0x1d   : > { %721 = vmatpush3.bf16.msra.mxu1 %v814_v4  ;;  %v817_v10 = vld [vmem:[%s1018_s23 + $0x18] sm:$0xff]   ;;  %v818_v12 = vld [vmem:[%s1018_s23 + $0x20] sm:$0xff]   ;;  %v819_v14 = vld [vmem:[%s1018_s23 + $0x28] sm:$0xff]  }
  0x1e   : > { %722 = vmatprep.subr.bf16.mxu1 %v909_v1  ;;  %707 = vmatpush3.bf16.msra.mxu0 %v808_v5  ;;  %v813_v15 = vld [vmem:[%s1013_s14] sm:$0xff]   ;;  %v820_v16 = vld [vmem:[%s1018_s23 + $0x30] sm:$0xff]   ;;  %v821_v17 = vld [vmem:[%s1018_s23 + $0x38] sm:$0xff]  }
  0x1f   : > { %708 = vmatprep.subr.bf16.mxu0 %v909_v1  ;;  %v822_v29 = vld [vmem:[%s1013_s14] sm:$0xff]   ;;  %s648_s14 = sshll.u32 %s218_s13, 4 }
  0x20   : > { %s220_s15 = scalar_lea.vmem [#allocation3], %s648_s14 }
  0x21   : > { %723 = vmatpush3.bf16.msra.mxu1 %v815_v6  ;;  %s556_s16 = sshll.u32 %s220_s15, 4  ;;  %s1053_s16 = int_to_ptr.vmem [resolvable:$true] %s556_s16 }
  0x22   : > { %724 = vmatprep.subr.bf16.mxu1 %v909_v1  ;;  %709 = vmatpush3.bf16.msra.mxu0 %v809_v7  ;;  %s829_s30 = scalar_lea.vmem %s1053_s16, 256  ;;  %p836_p1 = scmp.lt.s32.totalorder %s1053_s16, %s834_s6 }
  0x23   : > { %710 = vmatprep.subr.bf16.mxu0 %v909_v1  ;;  %p830_p12 = scmp.ne.s32.totalorder %s1053_s16, %s829_s30  ;;  %p837_p2 = scmp.lt.s32.totalorder %s835_s7, %s829_s30 }
  0x25   : > { %725 = vmatpush3.bf16.msra.mxu1 %v816_v8  ;;  %p831_p13 = pnand %p830_p12, %p982_p4  ;;  %p838_p3 = por %p837_p2, %p836_p1 }
  0x26   : > { %726 = vmatprep.subr.bf16.mxu1 %v909_v1  ;;  %711 = vmatpush3.bf16.msra.mxu0 %v810_v9 }
  0x27   : > { %712 = vmatprep.subr.bf16.mxu0 %v909_v1  ;;  %p832_p0 = pneg %p831_p13 }
  0x29   : > { %727 = vmatpush3.bf16.msra.mxu1 %v817_v10  ;;  %p839_p5 = pnand %p838_p3, %p832_p0 }
  0x2a   : > { %728 = vmatprep.subr.bf16.mxu1 %v909_v1  ;;  %713 = vmatpush3.bf16.msra.mxu0 %v811_v11 }
  0x2b   : > { %714 = vmatprep.subr.bf16.mxu0 %v909_v1 }
  0x2d   : > { %729 = vmatpush3.bf16.msra.mxu1 %v818_v12 }
  0x2e   : > { %730 = vmatprep.subr.bf16.mxu1 %v909_v1  ;;  %715 = vmatpush3.bf16.msra.mxu0 %v812_v13 }
  0x2f   : > { %740 = vmatprep.subr.bf16.mxu0 %v909_v1 }
  0x31   : > { %731 = vmatpush3.bf16.msra.mxu1 %v819_v14  ;;  %717 = vmatmul.mubr.bf16.vlgmr.msra.gmra.mrb[0].mxu0 %v813_v15 }
  0x32   : > { %732 = vmatprep.subr.bf16.mxu1 %v909_v1  ;;  %742 = vmatprep.mubr.msk.bf16.mxu0 %vm910_vm0, %v909_v1 }
  0x33   : > { %741 = vmatpush3.bf16.msra.mxu0 %v822_v29 }
  0x35   : > { %733 = vmatpush3.bf16.msra.mxu1 %v820_v16 }
  0x36   : > { %734 = vmatprep.subr.bf16.mxu1 %v909_v1 }
  0x39   : > { %735 = vmatpush3.bf16.msra.mxu1 %v821_v17 }
 0x104   : > { %v344_v18 = vpop.f32.mrb[0].mxu0 }
 0x105   : > { %v718_v19 = vpop.f32.mrb[1].mxu0 }
 0x106   : > { %v347_v20 = vpop.f32.mrb[2].mxu0 }
 0x107   : > { %v351_v21 = vpack.c.bf16 %v347_v20, %v344_v18  ;;  %v719_v22 = vpop.f32.mrb[3].mxu0 }
 0x109   : > { %737 = vmatmul.mubr.bf16.vlgmr.msra.gmra.mrb[0].mxu1 %v351_v21 }
 0x1dc   : > { %v450_v23 = vpop.f32.mrb[0].mxu1 }
 0x1dd   : > { %v738_v24 = vpop.f32.mrb[1].mxu1  ;;  %v458_v25 = vsel %vm457_vm1, %v450_v23, -inf }
 0x1de   : > { %459 = vmax.xlane.f32.xlu0 %v458_v25  ;;  %v453_v26 = vpop.f32.mrb[2].mxu1 }
 0x1df   : > { %v739_v27 = vpop.f32.mrb[3].mxu1  ;;  %v461_v28 = vsel %vm457_vm1, %v453_v26, -inf }
 0x1e2   : > { %462 = vmax.xlane.f32.xlu0 %v461_v28 }
 0x26b   : > { %v460_v30 = vpop.xlane.xlu0 %459 }
 0x26c   : > { %v464_v32 = vsub.f32 %v450_v23, %v460_v30 }
 0x26f   : > { %v463_v31 = vpop.xlane.xlu0 %462 }
 0x270   : > { %v465_v33 = vsub.f32 %v453_v26, %v463_v31 }
 0x272   : > { %v466_v34 = vpack.c.bf16 %v465_v33, %v464_v32 }
 0x274   : > { %v468_v35 = vmul.bf16 1069105081, %v466_v34 }
 0x276   : > { %823 = vpow.bf16 %v468_v35 }
 0x281   : > { %v824_v36 = vpop.eup %823 }
 0x282   : > { %743 = vmatmul.mubr.msk.bf16.vlgmr.msra.gmra.mrb[4].mxu0 %vm457_vm1, %v824_v36  ;;  %v470_v37 = vunpack.c.l.bf16 %v824_v36  ;;  %v471_v39 = vunpack.c.h.bf16 %v824_v36 }
 0x284   : > { %v472_v38 = vsel %vm457_vm1, %v470_v37, 0.0  ;;  %v475_v40 = vsel %vm457_vm1, %v471_v39, 0.0 }
 0x285   : > { %473 = vadd.xlane.f32.xlu1 %v472_v38 }
 0x289   : > { %476 = vadd.xlane.f32.xlu1 %v475_v40 }
 0x312   : > { %v474_v41 = vpop.xlane.xlu1 %473 }
 0x313   : > { %825 = vrcp.f32 %v474_v41 }
 0x316   : > { %v477_v42 = vpop.xlane.xlu1 %476 }
 0x317   : > { %827 = vrcp.f32 %v477_v42 }
 0x31d   : > { %v826_v43 = vpop.eup %825 }
 0x31e   : > { %v534_v46 = vmul.f32 %v826_v43, %v533_v44 }
 0x321   : > { %v828_v45 = vpop.eup %827 }
 0x322   : > { %v535_v50 = vmul.f32 %v828_v45, %v533_v44 }
 0x355   : > { %v523_v47 = vpop.f32.mrb[4].mxu0 }
 0x356   : > { %v536_v48 = vmul.f32 %v534_v46, %v523_v47  ;;  %v744_v49 = vpop.f32.mrb[5].mxu0 }
 0x357   : > { %v526_v51 = vpop.f32.mrb[6].mxu0 }
 0x358   : > { %538 = vst [vmem:[%s220_s15] sm:$0xff] %v536_v48  ;;  %v537_v52 = vmul.f32 %v535_v50, %v526_v51  ;;  %v745_v53 = vpop.f32.mrb[7].mxu0 }
 0x35a   : > { %539 = vst [vmem:[%s220_s15 + $0x8] sm:$0xff] %v537_v52 }
 0x35b   : > { %842 = shalt.err (!%p839_p5)
}
 0x35c   : > { %s843_s8 = scalar_lea.hbm %s1058_s27, 256  ;;  %s847_s11 = scalar_lea.hbm %s1110_s4, 512 }
 0x35d   : > { %p844_p6 = scmp.ne.s32.totalorder %s1058_s27, %s843_s8  ;;  %p848_p10 = scmp.lt.u32.totalorder %s1058_s27, %s1110_s4 }
 0x35e   : > { %p849_p11 = scmp.lt.u32.totalorder %s847_s11, %s843_s8  ;;  %p851_p13 = scmp.lt.u32.totalorder %s843_s8, %s1058_s27 }
 0x35f   : > { %p845_p7 = pnand %p844_p6, %p982_p4 }
 0x360   : > { %p850_p12 = por %p849_p11, %p848_p10 }
 0x361   : > { %p846_p9 = pneg %p845_p7 }
 0x362   : > { %p852_p0 = por %p851_p13, %p850_p12 }
 0x364   : > { %p853_p1 = pnand %p852_p0, %p846_p9 }
 0x366   : > { %856 = shalt.err (!%p853_p1)
}
 0x367   : > { %s912_s14 = smov 128   ;;  %s913_s15 = smov 8  }
 0x368   : > { %746 = dma.vmem_to_hbm [thread:$0]  (%p982_p4), %s1053_s16, 256, %s1058_s27, %s1060_s20, %s912_s14, %s912_s14, %s913_s15  }
 0x369 PF: > { %p752_p2 = scmp.ge.s32.totalorder %s907_s22, 2  ;;  %s571_s3 = sand.u32 1, %s887_s17  }
 0x36a   : > { %s572_s23 = scalar_lea.sflag [#allocation4], %s571_s3 }
 0x36b   : > { %p749_p3 = pnand %p752_p2, %p989_p8 }
 0x36d   : > { %882 = dma.done.wait (!%p749_p3), %s572_s23, 256  }
 0x36e   : > { %884 = vsyncadd (!%p749_p3), %s572_s23, 4294967040  ;;  %s18_s22 = sadd.s32 1, %s907_s22   ;;  %s1113_s17 = smov %s891_s18 }
 0x36f   : > { %p15_p5 = scmp.ge.s32.totalorder %s18_s22, 4   ;;  %s1114_s18 = smov %s895_s19 }
 0x370   : > { %s1115_s19 = smov %s995_s29  ;;  %s1116_s20 = smov %s903_s21 }
 0x371   : > { %s1117_s21 = smov %s1119_s24  ;;  %17 = sbr.rel (!%p15_p5) target bundleno = 6 (0x6), region = 75 }
 0x378   :  { %577 = vsyncpa [#allocation4], 1 }
 0x379   :  { %579 = vsyncpa [#allocation4 + $0x1], 1 }

</bundles_post_ra>
